<compile_context>
chip_gen: v6e
topology: v6e:2x2x1
jax: 0.10.0
libtpu: 0.0.40
codegen_flags: <defaults>
</compile_context>

<pallas_src>
import jax
import jax.numpy as jnp
from jax.experimental import pallas as pl
from jax.experimental.pallas import tpu as pltpu


def _mlp_kernel(xT_ref, w1t_ref, b1_ref, w2t_ref, b2_ref, oT_ref):
    # Fused hot path, all in VMEM, batch in lanes.
    xT = xT_ref[...].astype(jnp.float32)                                 # (10, TB)
    h = jnp.dot(w1t_ref[...], xT, preferred_element_type=jnp.float32)    # (5, TB) lane-dense N
    h = jnp.maximum(h + b1_ref[...], 0.0)                                # (5,1) bias bcast over lanes
    y = jnp.dot(w2t_ref[...], h, preferred_element_type=jnp.float32)     # (2, TB)
    oT_ref[...] = (y + b2_ref[...]).astype(oT_ref.dtype)                 # unmasked lane-dense store


def _round_up(n, m):
    return ((n + m - 1) // m) * m


def _mlp_pallas(xT, w1t, b1c, w2t, b2c, TB, out_dtype=jnp.float32):
    """Feature-major core. xT: (10, Bp) with Bp % TB == 0. Returns (2, Bp).

    Layout-tolerant callers should use this directly (no wrapper transposes/pads).
    """
    d_in, Bp = xT.shape
    d_hid, _ = w1t.shape
    d_out, _ = w2t.shape
    assert Bp % TB == 0 and TB % 128 == 0
    grid = (Bp // TB,)

    # VMEM budget: sublane-padded (10->16 in, 2->8 out) rows, double-buffered.
    in_bytes = _round_up(d_in, 8) * TB * xT.dtype.itemsize
    out_bytes = _round_up(d_out, 8) * TB * jnp.dtype(out_dtype).itemsize
    vmem_est = 2 * (in_bytes + out_bytes) + (1 << 20)        # + params/headroom
    vmem_limit = int(min(max(vmem_est, 16 << 20), 48 << 20))

    def const(a):  # full-array 2-D block, resident across all grid steps
        return pl.BlockSpec(a.shape, lambda i: (0, 0))

    return pl.pallas_call(
        _mlp_kernel,
        out_shape=jax.ShapeDtypeStruct((d_out, Bp), out_dtype),
        grid=grid,
        in_specs=[
            pl.BlockSpec((d_in, TB), lambda i: (0, i)),       # x tile, double-buffered
            const(w1t), const(b1c), const(w2t), const(b2c),   # resident params
        ],
        out_specs=pl.BlockSpec((d_out, TB), lambda i: (0, i)),
        compiler_params=pltpu.CompilerParams(
            dimension_semantics=("parallel",),
            vmem_limit_bytes=vmem_limit,
        ),
    )(xT, w1t, b1c, w2t, b2c)


def simple_model_forward(x, w1, b1, w2, b2, *, block_b=32768, x_dtype=None):
    """x: (B, 10) f32; w1: (10, 5); b1: (5,); w2: (5, 2); b2: (2,). Returns (B, 2) f32.

    Weights are (in_features, out_features), i.e. the TRANSPOSE of PyTorch's
    Linear.weight (out, in) layout: y = relu(x @ w1 + b1) @ w2 + b2.

    block_b: batch-tile in lanes (multiple of 128). 32K default fits all generations'
    scoped VMEM; raise to 64K-128K on v7x.  x_dtype=jnp.bfloat16 halves input HBM
    traffic (mem-bound op) at an accuracy cost; default keeps f32.
    """
    B, d_in = x.shape
    d_hid = w1.shape[1]
    d_out = w2.shape[1]

    TB = min(_round_up(block_b, 128), _round_up(B, 128))
    Bp = _round_up(B, TB)

    # Wrapper layout plumbing (only needed because of the (B,10)/(B,2) contract):
    # pad only the remainder; skip the pad pass entirely when B is already aligned.
    xT = x.T if B == Bp else jnp.pad(x.T, ((0, 0), (0, Bp - B)))  # (10, Bp)
    if x_dtype is not None:
        xT = xT.astype(x_dtype)

    w1t = w1.T                    # (5, 10)
    w2t = w2.T                    # (2, 5)
    b1c = b1.reshape(d_hid, 1)    # (5, 1)
    b2c = b2.reshape(d_out, 1)    # (2, 1)

    outT = _mlp_pallas(xT, w1t, b1c, w2t, b2c, TB)            # (2, Bp)

    # Padded columns compute relu(b1)@w2+b2 != 0, so they MUST be dropped here.
    if Bp != B:
        outT = outT[:, :B]
    return outT.T                                             # (B, 2)


def _reference(x, w1, b1, w2, b2):
    h = jnp.maximum(x @ w1 + b1, 0.0)
    return h @ w2 + b2


if __name__ == "__main__":
    key = jax.random.PRNGKey(0)
    kx, kw1, kb1, kw2, kb2, kx2 = jax.random.split(key, 6)

    B, D_IN, D_HID, D_OUT = 8, 10, 5, 2

    # Deterministic PyTorch-style uniform(-1/sqrt(fan_in), 1/sqrt(fan_in)) init.
    lim1 = 1.0 / jnp.sqrt(jnp.float32(D_IN))
    lim2 = 1.0 / jnp.sqrt(jnp.float32(D_HID))
    w1 = jax.random.uniform(kw1, (D_IN, D_HID), jnp.float32, -lim1, lim1)
    b1 = jax.random.uniform(kb1, (D_HID,), jnp.float32, -lim1, lim1)
    w2 = jax.random.uniform(kw2, (D_HID, D_OUT), jnp.float32, -lim2, lim2)
    b2 = jax.random.uniform(kb2, (D_OUT,), jnp.float32, -lim2, lim2)

    x = jax.random.normal(kx, (B, D_IN), jnp.float32)

    out = jax.block_until_ready(simple_model_forward(x, w1, b1, w2, b2))
    ref = _reference(x, w1, b1, w2, b2)
    assert out.shape == (B, D_OUT), out.shape
    assert jnp.allclose(out, ref, atol=1e-5, rtol=1e-5), "mismatch vs reference (B=8)"

    # Second check: non-multiple batch, >1 grid step (exercises tiling + pad + slice path).
    B2 = 300
    x2 = jax.random.normal(kx2, (B2, D_IN), jnp.float32)
    out2 = jax.block_until_ready(simple_model_forward(x2, w1, b1, w2, b2, block_b=128))
    ref2 = _reference(x2, w1, b1, w2, b2)
    assert out2.shape == (B2, D_OUT), out2.shape
    assert jnp.allclose(out2, ref2, atol=1e-5, rtol=1e-5), "mismatch vs reference (B=300)"

    print("KERNEL_OK")
</pallas_src>

<mosaic_0001>
module attributes {stable_mosaic.version = 11 : i64} {
  func.func @_mlp_kernel(%arg0: i32, %arg1: memref<10x128xf32, #tpu.memory_space<vmem>>, %arg2: memref<5x10xf32, #tpu.memory_space<vmem>>, %arg3: memref<5x1xf32, #tpu.memory_space<vmem>>, %arg4: memref<2x5xf32, #tpu.memory_space<vmem>>, %arg5: memref<2x1xf32, #tpu.memory_space<vmem>>, %arg6: memref<2x128xf32, #tpu.memory_space<vmem>>) attributes {dimension_semantics = [#tpu.dimension_semantics<parallel>], iteration_bounds = array<i64: 1>, scalar_prefetch = 0 : i64, scratch_operands = 0 : i64, tpu.core_type = #tpu.core_type<tc>, window_params = [{transform_indices = @transform_0, window_bounds = array<i64: 10, 128>}, {pipeline_mode = #tpu.pipeline_mode<synchronous>, transform_indices = @transform_1, window_bounds = array<i64: 5, 10>}, {pipeline_mode = #tpu.pipeline_mode<synchronous>, transform_indices = @transform_2, window_bounds = array<i64: 5, 1>}, {pipeline_mode = #tpu.pipeline_mode<synchronous>, transform_indices = @transform_3, window_bounds = array<i64: 2, 5>}, {pipeline_mode = #tpu.pipeline_mode<synchronous>, transform_indices = @transform_4, window_bounds = array<i64: 2, 1>}, {transform_indices = @transform_5, window_bounds = array<i64: 2, 128>}]} {
    %c0 = arith.constant 0 : index
    %c0_0 = arith.constant 0 : index
    %0 = vector.load %arg1[%c0, %c0_0] : memref<10x128xf32, #tpu.memory_space<vmem>>, vector<10x128xf32>
    %c0_1 = arith.constant 0 : index
    %c0_2 = arith.constant 0 : index
    %1 = vector.load %arg2[%c0_1, %c0_2] : memref<5x10xf32, #tpu.memory_space<vmem>>, vector<5x10xf32>
    %cst = arith.constant dense<0.000000e+00> : vector<5x128xf32>
    %2 = tpu.matmul %1, %0, %cst {dimension_numbers = #tpu.dot_dimension_numbers<[1], [0], [0], [1], [0, 0, 1, 1], [], []>} : vector<5x10xf32>, vector<10x128xf32>, vector<5x128xf32> -> vector<5x128xf32>
    %c0_3 = arith.constant 0 : index
    %c0_4 = arith.constant 0 : index
    %3 = vector.load %arg3[%c0_3, %c0_4] : memref<5x1xf32, #tpu.memory_space<vmem>>, vector<5x1xf32>
    %4 = vector.broadcast %3 : vector<5x1xf32> to vector<5x128xf32>
    %5 = arith.addf %2, %4 : vector<5x128xf32>
    %cst_5 = arith.constant 0.000000e+00 : f32
    %6 = vector.broadcast %cst_5 : f32 to vector<5x128xf32>
    %7 = arith.maximumf %5, %6 : vector<5x128xf32>
    %c0_6 = arith.constant 0 : index
    %c0_7 = arith.constant 0 : index
    %8 = vector.load %arg4[%c0_6, %c0_7] : memref<2x5xf32, #tpu.memory_space<vmem>>, vector<2x5xf32>
    %cst_8 = arith.constant dense<0.000000e+00> : vector<2x128xf32>
    %9 = tpu.matmul %8, %7, %cst_8 {dimension_numbers = #tpu.dot_dimension_numbers<[1], [0], [0], [1], [0, 0, 1, 1], [], []>} : vector<2x5xf32>, vector<5x128xf32>, vector<2x128xf32> -> vector<2x128xf32>
    %c0_9 = arith.constant 0 : index
    %c0_10 = arith.constant 0 : index
    %10 = vector.load %arg5[%c0_9, %c0_10] : memref<2x1xf32, #tpu.memory_space<vmem>>, vector<2x1xf32>
    %11 = vector.broadcast %10 : vector<2x1xf32> to vector<2x128xf32>
    %12 = arith.addf %9, %11 : vector<2x128xf32>
    %c0_11 = arith.constant 0 : index
    %c0_12 = arith.constant 0 : index
    %13 = vector.load %arg6[%c0_11, %c0_12] : memref<2x128xf32, #tpu.memory_space<vmem>>, vector<2x128xf32>
    tpu.vector_store %arg6[%c0_11, %c0_12], %12 {strides = array<i32>} : memref<2x128xf32, #tpu.memory_space<vmem>>, vector<2x128xf32>,
    return
  }
  func.func @transform_0(%arg0: i32) -> (i32, i32) {
    %c0_i32 = arith.constant 0 : i32
    %c0_i32_0 = arith.constant 0 : i32
    return %c0_i32, %arg0 : i32, i32
  }
  func.func @transform_1(%arg0: i32) -> (i32, i32) {
    %c0_i32 = arith.constant 0 : i32
    %c0_i32_0 = arith.constant 0 : i32
    %c0_i32_1 = arith.constant 0 : i32
    return %c0_i32, %c0_i32_0 : i32, i32
  }
  func.func @transform_2(%arg0: i32) -> (i32, i32) {
    %c0_i32 = arith.constant 0 : i32
    %c0_i32_0 = arith.constant 0 : i32
    %c0_i32_1 = arith.constant 0 : i32
    return %c0_i32, %c0_i32_0 : i32, i32
  }
  func.func @transform_3(%arg0: i32) -> (i32, i32) {
    %c0_i32 = arith.constant 0 : i32
    %c0_i32_0 = arith.constant 0 : i32
    %c0_i32_1 = arith.constant 0 : i32
    return %c0_i32, %c0_i32_0 : i32, i32
  }
  func.func @transform_4(%arg0: i32) -> (i32, i32) {
    %c0_i32 = arith.constant 0 : i32
    %c0_i32_0 = arith.constant 0 : i32
    %c0_i32_1 = arith.constant 0 : i32
    return %c0_i32, %c0_i32_0 : i32, i32
  }
  func.func @transform_5(%arg0: i32) -> (i32, i32) {
    %c0_i32 = arith.constant 0 : i32
    %c0_i32_0 = arith.constant 0 : i32
    return %c0_i32, %arg0 : i32, i32
  }
}

</mosaic_0001>

<bundles_post_ra>
// kernel: tpu_custom_call.1
= control target key start
LH: loop header
LB: loop body
LE: loop exit
PB: predicated region body
PF: predicated region fallthrough
CT: control target
= control target key end

     0   :  { %10 = vsyncpa [#allocation3], 0  ;;  %s352_s0 = inlined_call_operand.hbm [shape: f32[10,128], index: 0, kind: input, shape index: {}]   ;;  %s353_s1 = inlined_call_operand.vmem [shape: f32[5,10], index: 1, kind: input, shape index: {}]   ;;  %s354_s2 = inlined_call_operand.vmem [shape: f32[5,1], index: 2, kind: input, shape index: {}]   ;;  %s355_s3 = inlined_call_operand.vmem [shape: f32[2,5], index: 3, kind: input, shape index: {}]   ;;  %s356_s4 = inlined_call_operand.vmem [shape: f32[2,1], index: 4, kind: input, shape index: {}]   ;;  %s357_s5 = inlined_call_operand.hbm [shape: f32[2,128], index: 5, kind: output, shape index: {}]  }
   0x1   :  { %11 = vsyncpa [#allocation4], 0  ;;  %s297_s18 = smov [#allocation2]  }
   0x2   :  { %s17_s19 = sshll.u32 %s297_s18, 4  ;;  %s18_s19 = int_to_ptr.vmem [resolvable:$true] %s17_s19 }
   0x3   :  { %s261_s20 = scalar_lea.vmem %s18_s19, 256  ;;  %p266_p1 = scmp.lt.s32.totalorder %s18_s19, %s18_s19 }
   0x4   :  { %p262_p0 = scmp.ne.s32.totalorder %s18_s19, %s261_s20  ;;  %p267_p2 = scmp.lt.s32.totalorder %s261_s20, %s261_s20 }
   0x6   :  { %p268_p3 = por %p267_p2, %p266_p1 }
   0x8   :  { %p269_p4 = pnand %p268_p3, %p262_p0 }
   0xa   :  { %272 = shalt.err (!%p269_p4)
}
   0xb   :  { %s298_s21 = smov 128   ;;  %s299_s22 = smov 8  }
   0xc   :  { %23 = dma.hbm_to_vmem [thread:$0]  %s352_s0, 256, %s18_s19, [#allocation3], %s298_s21, %s298_s21, %s299_s22  }
   0xd   :  { %293 = dma.done.wait [#allocation3], 256  }
   0xe   :  { %294 = vsyncadd [#allocation3], 4294967040  ;;  %v300_v0 = vmov 0.0   ;;  %vm301_vm0 = vmmov 0   ;;  %v302_v1 = vmov 0   ;;  %vm48_vm1 = vcmask 1041408  }
   0xf   :  { %233 = vmatprep.subr.mxu0 %v300_v0  ;;  %237 = vmatprep.mubr.msk.f32.mxu0 %vm301_vm0, %v300_v0  ;;  %v36_v2 = vld [vmem:[#allocation2 + $0x8] sm:$0x3]  ;;  %v35_v3 = vld [vmem:[#allocation2] sm:$0xff]  ;;  %vm44_vm2 = vcmask 80896   ;;  %vm134_vm3 = vcmask 1044480   ;;  %vm130_vm4 = vcmask 39936  }
  0x10   :  { %252 = vset.pattern.permute.xlu0 %v302_v1  ;;  %240 = vmatprep.subr.mxu1 %v300_v0  ;;  %v37_v4 = vld [vmem:[%s353_s1] sm:$0x1f] }
  0x11   :  { %242 = vmatprep.mubr.msk.f32.mxu1 %vm301_vm0, %v300_v0  ;;  %234 = vmatpush3.msk.msra.mxu0 %vm48_vm1, %v36_v2  ;;  %v38_v5 = vld [vmem:[%s354_s2] sm:$0x1f]  ;;  %s303_s2 = smov [#allocation5]  }
  0x12   :  { %235 = vmatprep.subr.mxu0 %v300_v0  ;;  %41 = vperm.xlu0 %252, %v38_v5   ;;  %v124_v6 = vld [vmem:[%s356_s4] sm:$0x3]  ;;  %s215_s6 = sshll.u32 %s303_s2, 4  ;;  %s216_s6 = int_to_ptr.vmem [resolvable:$true] %s215_s6 }
  0x13   :  { %236 = vmatpush3.msra.mxu0 %v35_v3  ;;  %v123_v12 = vld [vmem:[%s355_s3] sm:$0x3]  ;;  %s273_s4 = scalar_lea.vmem %s216_s6, 32  ;;  %p278_p6 = scmp.lt.s32.totalorder %s216_s6, %s216_s6 }
  0x14   :  { %238 = vmatmul.mubr.msk.f32.vlgmr.msra.gmra.mxu0 %vm44_vm2, %v37_v4  ;;  %p274_p5 = scmp.ne.s32.totalorder %s216_s6, %s273_s4  ;;  %p279_p7 = scmp.lt.s32.totalorder %s273_s4, %s273_s4 }
  0x16   :  { %127 = vperm.xlu0 %252, %v124_v6   ;;  %p280_p8 = por %p279_p7, %p278_p6 }
  0x18   :  { %p281_p9 = pnand %p280_p8, %p274_p5 }
  0x8d   :  { %v42_v7 = vpop.permute.xlu0 %41 }
  0x91   :  { %v128_v13 = vpop.permute.xlu0 %127 }
  0xd4   :  { %v118_v8 = vpop.f32.mrf.mxu0 }
  0xd5   :  { %v119_v9 = vadd.f32 %v118_v8, %v42_v7 }
  0xd6   :  { %v239_v10 = vpop.f32.mrf.mxu0 }
  0xd7   :  { %v122_v11 = vmax.f32 %v119_v9, 0.0 }
  0xd9   :  { %241 = vmatpush3.msk.msra.mxu1 %vm134_vm3, %v122_v11 }
  0xda   :  { %243 = vmatmul.mubr.msk.f32.vlgmr.msra.gmra.mxu1 %vm130_vm4, %v123_v12 }
 0x19a   :  { %v204_v14 = vpop.f32.mrf.mxu1 }
 0x19b   :  { %v205_v15 = vadd.f32 %v204_v14, %v128_v13 }
 0x19c   :  { %v244_v16 = vpop.f32.mrf.mxu1 }
 0x19d   :  { %208 = vst [vmem:[#allocation5] sm:$0x3] %v205_v15 }
 0x19e   :  { %284 = shalt.err (!%p281_p9)
}
 0x19f   :  { %218 = dma.vmem_to_hbm [thread:$0]  %s216_s6, 32, %s357_s5, [#allocation4]  }
 0x1a0   :  { %295 = dma.done.wait [#allocation4], 32  }
 0x1a1   :  { %296 = vsyncadd [#allocation4], 4294967264 }
 0x1a2   :  { %222 = vsyncpa [#allocation3], 1 }
 0x1a3   :  { %223 = vsyncpa [#allocation4], 1 }

</bundles_post_ra>
